<compile_context>
chip_gen: v5e
topology: v5e:2x2
jax: 0.10.0
libtpu: 0.0.40
codegen_flags: <defaults>
</compile_context>

<pallas_src>
import jax
import jax.numpy as jnp
from jax.experimental import pallas as pl
from jax.experimental.pallas import tpu as pltpu

# ---- model hyper-parameters (small, consistent with MalConv structure) ----
VOCAB = 257          # 256 byte values + 1 padding value
E = 8                # embedding_size
W = 64               # conv kernel size == stride (500 in real MalConv)
LP = 16              # number of non-overlapping windows
L = W * LP           # max_input_size
C = 128              # conv channels / dense hidden size
B = 2                # batch
OUT_PAD = 128        # lane-dense output width; column 0 is the probability


def malconv_kernel(xw_ref, wc_ref, bc_ref, wd1_ref, bd1_ref, wd2_ref, bd2_ref,
                   out_ref):
    # Fused gated conv: one bf16 (B*LP, W*E) @ (W*E, 2C) matmul gives [c1 | c2],
    # accumulated in f32 on the MXU.
    cc = jnp.dot(xw_ref[...], wc_ref[...],
                 preferred_element_type=jnp.float32) + bc_ref[...]   # (B*LP, 2C) f32
    c1 = cc[:, :C]
    c2 = cc[:, C:]
    gated = jnp.maximum(c1, 0.0) * jax.nn.sigmoid(c2)                # (B*LP, C) f32

    # Global max pool over the window axis (leading-dim-split reshape only).
    g = jnp.max(gated.reshape(B, LP, C), axis=1)                     # (B, C) f32

    # Dense head for the whole batch at once (bf16 operands, f32 accumulation).
    h = jnp.dot(g.astype(jnp.bfloat16), wd1_ref[...],
                preferred_element_type=jnp.float32) + bd1_ref[...]   # (B, C) f32
    h = jnp.maximum(h, 0.0)                                          # relu(dense_1)
    logit = jnp.sum(h * wd2_ref[...], axis=1, keepdims=True) + bd2_ref[0, 0]
    prob = jax.nn.sigmoid(logit)                                     # (B, 1)
    out_ref[...] = jnp.broadcast_to(prob, (B, OUT_PAD))


def prepare_params(params):
    """One-time (parameter-load-time) weight preprocessing; NOT in the per-call path."""
    emb_tbl, cw1, cb1, cw2, cb2, dw1, db1, dw2, db2 = params
    # conv weights (C, E, W) -> (W*E, C), concatenated into one (W*E, 2C) matrix
    w1f = jnp.transpose(cw1, (2, 1, 0)).reshape(W * E, C)
    w2f = jnp.transpose(cw2, (2, 1, 0)).reshape(W * E, C)
    wc = jnp.concatenate([w1f, w2f], axis=1).astype(jnp.bfloat16)    # (W*E, 2C) bf16
    bc = jnp.concatenate([cb1, cb2]).reshape(1, 2 * C)               # (1, 2C) f32
    wd1 = dw1.T.astype(jnp.bfloat16)                                 # (C, C) bf16
    bd1 = db1.reshape(1, C)                                          # (1, C) f32
    wd2 = dw2.reshape(1, C)                                          # (1, C) f32
    bd2 = db2.reshape(1, 1)                                          # scalar -> SMEM
    emb_bf16 = emb_tbl.astype(jnp.bfloat16)                          # (VOCAB, E) bf16
    return (emb_bf16, wc, bc, wd1, bd1, wd2, bd2)


@jax.jit
def malconv_forward(x, prepared):
    """x: (B, 1, L) float byte values in [0, VOCAB). Returns (B, 1) sigmoid probs."""
    emb_bf16, wc, bc, wd1, bd1, wd2, bd2 = prepared

    # --- glue: embedding lookup + non-overlapping window framing (stride==kernel) ---
    # TODO(synk): at production MalConv sizes (W=500, L ~ 2 MB) move the gather
    # in-kernel (VMEM-resident (257,E) table, per-tile expansion) and switch to a
    # window-tiled grid with a VMEM max-pool accumulator (v7x: 64 MiB VMEM, 2 TCs,
    # parallel batch axis); at the toy L=1024 the XLA gather is negligible.
    ids = jnp.squeeze(x, axis=1).astype(jnp.int32)                   # LongTensor cast
    emb = jnp.take(emb_bf16, ids, axis=0)                            # (B, L, E) bf16
    xw = emb.reshape(B * LP, W * E)                                  # fused-M slab, w-major/e-minor

    out_padded = pl.pallas_call(
        malconv_kernel,
        out_shape=jax.ShapeDtypeStruct((B, OUT_PAD), jnp.float32),
        in_specs=[
            pl.BlockSpec(memory_space=pltpu.MemorySpace.VMEM),   # xw  (32, 512) bf16
            pl.BlockSpec(memory_space=pltpu.MemorySpace.VMEM),   # wc  (512, 256) bf16
            pl.BlockSpec(memory_space=pltpu.MemorySpace.VMEM),   # bc  (1, 256) f32
            pl.BlockSpec(memory_space=pltpu.MemorySpace.VMEM),   # wd1 (128, 128) bf16
            pl.BlockSpec(memory_space=pltpu.MemorySpace.VMEM),   # bd1 (1, 128) f32
            pl.BlockSpec(memory_space=pltpu.MemorySpace.VMEM),   # wd2 (1, 128) f32
            pl.BlockSpec(memory_space=pltpu.MemorySpace.SMEM),   # bd2 scalar
        ],
        out_specs=pl.BlockSpec(memory_space=pltpu.MemorySpace.VMEM),
    )(xw, wc, bc, wd1, bd1, wd2, bd2)

    return out_padded[:, :1]                                         # (B, 1)


def reference_forward(x, params):
    """Pure-JAX f32 reference reproducing the PyTorch semantics."""
    emb_tbl, cw1, cb1, cw2, cb2, dw1, db1, dw2, db2 = params
    ids = jnp.squeeze(x, axis=1).astype(jnp.int32)
    emb = jnp.take(emb_tbl, ids, axis=0)                             # (B, L, E)
    xt = jnp.transpose(emb, (0, 2, 1))                               # (B, E, L)  NCL
    # Conv1d stride==kernel: einsum over non-overlapping windows
    xwin = xt.reshape(B, E, LP, W)                                   # (B, E, Lp, W)
    c1 = jnp.einsum('belw,cew->blc', xwin, cw1) + cb1
    c2 = jnp.einsum('belw,cew->blc', xwin, cw2) + cb2
    gated = jnp.maximum(c1, 0.0) * jax.nn.sigmoid(c2)                # (B, Lp, C)
    g = jnp.max(gated, axis=1)                                       # global max pool -> (B, C)
    h = jnp.maximum(g @ dw1.T + db1, 0.0)
    logit = h @ dw2.T + db2
    return jax.nn.sigmoid(logit)                                     # (B, 1)


def init_params(key):
    ks = jax.random.split(key, 9)
    s = 0.05
    emb_tbl = jax.random.normal(ks[0], (VOCAB, E), jnp.float32) * s
    cw1 = jax.random.normal(ks[1], (C, E, W), jnp.float32) * s
    cb1 = jax.random.normal(ks[2], (C,), jnp.float32) * s
    cw2 = jax.random.normal(ks[3], (C, E, W), jnp.float32) * s
    cb2 = jax.random.normal(ks[4], (C,), jnp.float32) * s
    dw1 = jax.random.normal(ks[5], (C, C), jnp.float32) * s
    db1 = jax.random.normal(ks[6], (C,), jnp.float32) * s
    dw2 = jax.random.normal(ks[7], (1, C), jnp.float32) * s
    db2 = jax.random.normal(ks[8], (1,), jnp.float32) * s
    return (emb_tbl, cw1, cb1, cw2, cb2, dw1, db1, dw2, db2)


if __name__ == "__main__":
    key = jax.random.PRNGKey(0)
    kp, kx = jax.random.split(key)
    params = init_params(kp)
    prepared = prepare_params(params)        # one-time weight fusion / bf16 cast
    # byte values as floats (as produced by bytes_to_numpy), shape (B, 1, L)
    x = jax.random.randint(kx, (B, 1, L), 0, VOCAB).astype(jnp.float32)

    out = malconv_forward(x, prepared)
    out = jax.block_until_ready(out)

    ref = reference_forward(x, params)
    assert out.shape == (B, 1)
    # bf16 matmul operands -> loosened tolerance vs. the f32 reference
    assert jnp.allclose(out, ref, atol=2e-2, rtol=2e-2), (out, ref)
    print("KERNEL_OK")
</pallas_src>

<mosaic_0001>
module attributes {stable_mosaic.version = 11 : i64} {
  func.func @malconv_kernel(%arg0: memref<32x512xbf16, #tpu.memory_space<vmem>>, %arg1: memref<512x256xbf16, #tpu.memory_space<vmem>>, %arg2: memref<1x256xf32, #tpu.memory_space<vmem>>, %arg3: memref<128x128xbf16, #tpu.memory_space<vmem>>, %arg4: memref<1x128xf32, #tpu.memory_space<vmem>>, %arg5: memref<1x128xf32, #tpu.memory_space<vmem>>, %arg6: memref<1x1xf32, #tpu.memory_space<smem>>, %arg7: memref<2x128xf32, #tpu.memory_space<vmem>>) attributes {dimension_semantics = [], scalar_prefetch = 0 : i64, scratch_operands = 0 : i64, tpu.core_type = #tpu.core_type<tc>} {
    %c0 = arith.constant 0 : index
    %c0_0 = arith.constant 0 : index
    %0 = vector.load %arg0[%c0, %c0_0] : memref<32x512xbf16, #tpu.memory_space<vmem>>, vector<32x512xbf16>
    %c0_1 = arith.constant 0 : index
    %c0_2 = arith.constant 0 : index
    %1 = vector.load %arg1[%c0_1, %c0_2] : memref<512x256xbf16, #tpu.memory_space<vmem>>, vector<512x256xbf16>
    %cst = arith.constant dense<0.000000e+00> : vector<32x256xf32>
    %2 = tpu.matmul %0, %1, %cst {dimension_numbers = #tpu.dot_dimension_numbers<[1], [0], [0], [1], [0, 0, 1, 1], [], []>} : vector<32x512xbf16>, vector<512x256xbf16>, vector<32x256xf32> -> vector<32x256xf32>
    %c0_3 = arith.constant 0 : index
    %c0_4 = arith.constant 0 : index
    %3 = vector.load %arg2[%c0_3, %c0_4] : memref<1x256xf32, #tpu.memory_space<vmem>>, vector<1x256xf32>
    %4 = vector.broadcast %3 : vector<1x256xf32> to vector<32x256xf32>
    %5 = arith.addf %2, %4 : vector<32x256xf32>
    %6 = vector.extract_strided_slice %5 {offsets = [0, 0], sizes = [32, 128], strides = [1, 1]} : vector<32x256xf32> to vector<32x128xf32>
    %7 = vector.extract_strided_slice %5 {offsets = [0, 128], sizes = [32, 128], strides = [1, 1]} : vector<32x256xf32> to vector<32x128xf32>
    %cst_5 = arith.constant 0.000000e+00 : f32
    %8 = vector.broadcast %cst_5 : f32 to vector<32x128xf32>
    %9 = arith.maximumf %6, %8 : vector<32x128xf32>
    %10 = arith.negf %7 : vector<32x128xf32>
    %11 = math.exp %10 : vector<32x128xf32>
    %cst_6 = arith.constant 1.000000e+00 : f32
    %12 = vector.broadcast %cst_6 : f32 to vector<32x128xf32>
    %13 = arith.addf %12, %11 : vector<32x128xf32>
    %14 = arith.divf %12, %13 : vector<32x128xf32>
    %15 = arith.mulf %9, %14 : vector<32x128xf32>
    %16 = vector.shape_cast %15 : vector<32x128xf32> to vector<2x16x128xf32>
    %cst_7 = arith.constant dense<0xFF800000> : vector<2x128xf32>
    %17 = vector.multi_reduction <maximumf>, %16, %cst_7 [1] : vector<2x16x128xf32> to vector<2x128xf32>
    %18 = arith.truncf %17 : vector<2x128xf32> to vector<2x128xbf16>
    %c0_8 = arith.constant 0 : index
    %c0_9 = arith.constant 0 : index
    %19 = vector.load %arg3[%c0_8, %c0_9] : memref<128x128xbf16, #tpu.memory_space<vmem>>, vector<128x128xbf16>
    %cst_10 = arith.constant dense<0.000000e+00> : vector<2x128xf32>
    %20 = tpu.matmul %18, %19, %cst_10 {dimension_numbers = #tpu.dot_dimension_numbers<[1], [0], [0], [1], [0, 0, 1, 1], [], []>} : vector<2x128xbf16>, vector<128x128xbf16>, vector<2x128xf32> -> vector<2x128xf32>
    %c0_11 = arith.constant 0 : index
    %c0_12 = arith.constant 0 : index
    %21 = vector.load %arg4[%c0_11, %c0_12] : memref<1x128xf32, #tpu.memory_space<vmem>>, vector<1x128xf32>
    %22 = vector.broadcast %21 : vector<1x128xf32> to vector<2x128xf32>
    %23 = arith.addf %20, %22 : vector<2x128xf32>
    %cst_13 = arith.constant 0.000000e+00 : f32
    %24 = vector.broadcast %cst_13 : f32 to vector<2x128xf32>
    %25 = arith.maximumf %23, %24 : vector<2x128xf32>
    %c0_14 = arith.constant 0 : index
    %c0_15 = arith.constant 0 : index
    %26 = vector.load %arg5[%c0_14, %c0_15] : memref<1x128xf32, #tpu.memory_space<vmem>>, vector<1x128xf32>
    %27 = vector.broadcast %26 : vector<1x128xf32> to vector<2x128xf32>
    %28 = arith.mulf %25, %27 : vector<2x128xf32>
    %cst_16 = arith.constant dense<0.000000e+00> : vector<2xf32>
    %29 = vector.multi_reduction <add>, %28, %cst_16 [1] : vector<2x128xf32> to vector<2xf32>
    %30 = vector.shape_cast %29 : vector<2xf32> to vector<2x1xf32>
    %c0_17 = arith.constant 0 : index
    %c0_18 = arith.constant 0 : index
    %31 = memref.load %arg6[%c0_17, %c0_18] : memref<1x1xf32, #tpu.memory_space<smem>>
    %32 = vector.broadcast %31 : f32 to vector<2x1xf32>
    %33 = arith.addf %30, %32 : vector<2x1xf32>
    %34 = arith.negf %33 : vector<2x1xf32>
    %35 = math.exp %34 : vector<2x1xf32>
    %cst_19 = arith.constant 1.000000e+00 : f32
    %36 = vector.broadcast %cst_19 : f32 to vector<2x1xf32>
    %37 = arith.addf %36, %35 : vector<2x1xf32>
    %38 = arith.divf %36, %37 : vector<2x1xf32>
    %39 = vector.shape_cast %38 : vector<2x1xf32> to vector<2x1xf32>
    %40 = vector.broadcast %39 : vector<2x1xf32> to vector<2x128xf32>
    %c0_20 = arith.constant 0 : index
    %c0_21 = arith.constant 0 : index
    %41 = vector.load %arg7[%c0_20, %c0_21] : memref<2x128xf32, #tpu.memory_space<vmem>>, vector<2x128xf32>
    tpu.vector_store %arg7[%c0_20, %c0_21], %40 {strides = array<i32>} : memref<2x128xf32, #tpu.memory_space<vmem>>, vector<2x128xf32>,
    return
  }
}

</mosaic_0001>

<bundles_post_ra>
// kernel: malconv_forward.1
= control target key start
LH: loop header
LB: loop body
LE: loop exit
PB: predicated region body
PF: predicated region fallthrough
CT: control target
= control target key end

     0   :  { %s1849_s1 = inlined_call_operand.vmem [shape: bf16[512,256], index: 1, kind: input, shape index: {}]   ;;  %s1850_s0 = inlined_call_operand.vmem [shape: bf16[32,512], index: 0, kind: input, shape index: {}]   ;;  %s1851_s2 = inlined_call_operand.vmem [shape: f32[1,256], index: 2, kind: input, shape index: {}]   ;;  %s1852_s4 = inlined_call_operand.vmem [shape: f32[1,128], index: 4, kind: input, shape index: {}]   ;;  %s1853_s3 = inlined_call_operand.vmem [shape: bf16[128,128], index: 3, kind: input, shape index: {}]   ;;  %s1854_s5 = inlined_call_operand.vmem [shape: f32[1,128], index: 5, kind: input, shape index: {}]   ;;  %s1855_s6 = inlined_call_operand.<no memory space> [shape: f32[1,1], index: 6, kind: input, shape index: {}]   ;;  %s1856_s7 = inlined_call_operand.vmem [shape: f32[2,128], index: 7, kind: output, shape index: {}]  }
   0x1   :  { %v933_v0 = vld [vmem:[%s1849_s1 + $0x70] sm:$0xf]  ;;  %v1191_v1 = vld [vmem:[%s1849_s1 + $0x74] sm:$0xf0]  ;;  %v925_v11 = vld [vmem:[%s1849_s1 + $0x60] sm:$0xf] }
   0x2   :  { %v997_v2 = vld [vmem:[%s1849_s1 + $0xf0] sm:$0xf]  ;;  %v934_v3 = vor.u32 %v1191_v1, %v933_v0  ;;  %v1207_v4 = vld [vmem:[%s1849_s1 + $0xf4] sm:$0xf0]  ;;  %v1189_v13 = vld [vmem:[%s1849_s1 + $0x64] sm:$0xf0] }
   0x3   :  { %v1061_v5 = vld [vmem:[%s1849_s1 + $0x170] sm:$0xf]  ;;  %v1223_v6 = vld [vmem:[%s1849_s1 + $0x174] sm:$0xf0]  ;;  %v998_v7 = vor.u32 %v1207_v4, %v997_v2  ;;  %v989_v14 = vld [vmem:[%s1849_s1 + $0xe0] sm:$0xf]  ;;  %v926_v16 = vor.u32 %v1189_v13, %v925_v11 }
   0x4   :  { %v1062_v8 = vor.u32 %v1223_v6, %v1061_v5  ;;  %v1125_v9 = vld [vmem:[%s1849_s1 + $0x1f0] sm:$0xf]  ;;  %v1239_v10 = vld [vmem:[%s1849_s1 + $0x1f4] sm:$0xf0]  ;;  %465 = vmatpush.bf16.msra.mxu0 %v934_v3  ;;  %v1205_v15 = vld [vmem:[%s1849_s1 + $0xe4] sm:$0xf0] }
   0x5   :  { %v1126_v12 = vor.u32 %v1239_v10, %v1125_v9  ;;  %484 = vmatpush.bf16.msra.mxu1 %v998_v7  ;;  %v990_v17 = vor.u32 %v1205_v15, %v989_v14  ;;  %v1053_v18 = vld [vmem:[%s1849_s1 + $0x160] sm:$0xf]  ;;  %v1221_v19 = vld [vmem:[%s1849_s1 + $0x164] sm:$0xf0]  ;;  %v917_v23 = vld [vmem:[%s1849_s1 + $0x50] sm:$0xf] }
   0x6   :  { %503 = vmatpush.bf16.msra.mxu2 %v1062_v8  ;;  %v1117_v20 = vld [vmem:[%s1849_s1 + $0x1e0] sm:$0xf]  ;;  %v1054_v21 = vor.u32 %v1221_v19, %v1053_v18  ;;  %v1237_v22 = vld [vmem:[%s1849_s1 + $0x1e4] sm:$0xf0]  ;;  %v1187_v24 = vld [vmem:[%s1849_s1 + $0x54] sm:$0xf0] }
   0x7   :  { %522 = vmatpush.bf16.msra.mxu3 %v1126_v12  ;;  %v1118_v25 = vor.u32 %v1237_v22, %v1117_v20  ;;  %v981_v26 = vld [vmem:[%s1849_s1 + $0xd0] sm:$0xf]  ;;  %v1203_v27 = vld [vmem:[%s1849_s1 + $0xd4] sm:$0xf0]  ;;  %v918_v29 = vor.u32 %v1187_v24, %v917_v23  ;;  %v909_v35 = vld [vmem:[%s1849_s1 + $0x40] sm:$0xf] }
   0x8   :  { %v1045_v28 = vld [vmem:[%s1849_s1 + $0x150] sm:$0xf]  ;;  %466 = vmatpush.bf16.msra.mxu0 %v926_v16  ;;  %v1219_v30 = vld [vmem:[%s1849_s1 + $0x154] sm:$0xf0]  ;;  %v982_v33 = vor.u32 %v1203_v27, %v981_v26  ;;  %v1185_v36 = vld [vmem:[%s1849_s1 + $0x44] sm:$0xf0] }
   0x9   :  { %v1109_v31 = vld [vmem:[%s1849_s1 + $0x1d0] sm:$0xf]  ;;  %v1235_v32 = vld [vmem:[%s1849_s1 + $0x1d4] sm:$0xf0]  ;;  %485 = vmatpush.bf16.msra.mxu1 %v990_v17  ;;  %v1046_v34 = vor.u32 %v1219_v30, %v1045_v28  ;;  %v973_v37 = vld [vmem:[%s1849_s1 + $0xc0] sm:$0xf]  ;;  %v910_v44 = vor.u32 %v1185_v36, %v909_v35 }
   0xa   :  { %504 = vmatpush.bf16.msra.mxu2 %v1054_v21  ;;  %v1110_v38 = vor.u32 %v1235_v32, %v1109_v31  ;;  %v1201_v39 = vld [vmem:[%s1849_s1 + $0xc4] sm:$0xf0]  ;;  %v1037_v40 = vld [vmem:[%s1849_s1 + $0x140] sm:$0xf]  ;;  %v901_v47 = vld [vmem:[%s1849_s1 + $0x30] sm:$0xf] }
   0xb   :  { %523 = vmatpush.bf16.msra.mxu3 %v1118_v25  ;;  %v1217_v41 = vld [vmem:[%s1849_s1 + $0x144] sm:$0xf0]  ;;  %v1101_v42 = vld [vmem:[%s1849_s1 + $0x1c0] sm:$0xf]  ;;  %v974_v45 = vor.u32 %v1201_v39, %v973_v37  ;;  %v1183_v48 = vld [vmem:[%s1849_s1 + $0x34] sm:$0xf0] }
   0xc   :  { %v1233_v43 = vld [vmem:[%s1849_s1 + $0x1c4] sm:$0xf0]  ;;  %467 = vmatpush.bf16.msra.mxu0 %v918_v29  ;;  %v1038_v46 = vor.u32 %v1217_v41, %v1037_v40  ;;  %v965_v49 = vld [vmem:[%s1849_s1 + $0xb0] sm:$0xf]  ;;  %v1199_v51 = vld [vmem:[%s1849_s1 + $0xb4] sm:$0xf0]  ;;  %v902_v56 = vor.u32 %v1183_v48, %v901_v47 }
   0xd   :  { %486 = vmatpush.bf16.msra.mxu1 %v982_v33  ;;  %v1102_v50 = vor.u32 %v1233_v43, %v1101_v42  ;;  %v1029_v52 = vld [vmem:[%s1849_s1 + $0x130] sm:$0xf]  ;;  %v1215_v53 = vld [vmem:[%s1849_s1 + $0x134] sm:$0xf0]  ;;  %v966_v57 = vor.u32 %v1199_v51, %v965_v49  ;;  %v893_v59 = vld [vmem:[%s1849_s1 + $0x20] sm:$0xf] }
   0xe   :  { %505 = vmatpush.bf16.msra.mxu2 %v1046_v34  ;;  %v1093_v54 = vld [vmem:[%s1849_s1 + $0x1b0] sm:$0xf]  ;;  %v1231_v55 = vld [vmem:[%s1849_s1 + $0x1b4] sm:$0xf0]  ;;  %v1030_v58 = vor.u32 %v1215_v53, %v1029_v52  ;;  %v1181_v60 = vld [vmem:[%s1849_s1 + $0x24] sm:$0xf0] }
   0xf   :  { %524 = vmatpush.bf16.msra.mxu3 %v1110_v38  ;;  %v957_v61 = vld [vmem:[%s1849_s1 + $0xa0] sm:$0xf]  ;;  %v1094_v62 = vor.u32 %v1231_v55, %v1093_v54  ;;  %v1197_v63 = vld [vmem:[%s1849_s1 + $0xa4] sm:$0xf0]  ;;  %v894_v4 = vor.u32 %v1181_v60, %v893_v59  ;;  %v885_v7 = vld [vmem:[%s1849_s1 + $0x10] sm:$0xf] }
  0x10   :  { %468 = vmatpush.bf16.msra.mxu0 %v910_v44  ;;  %v1021_v0 = vld [vmem:[%s1849_s1 + $0x120] sm:$0xf]  ;;  %v1213_v1 = vld [vmem:[%s1849_s1 + $0x124] sm:$0xf0]  ;;  %v958_v5 = vor.u32 %v1197_v63, %v957_v61  ;;  %v1179_v8 = vld [vmem:[%s1849_s1 + $0x14] sm:$0xf0] }
  0x11   :  { %487 = vmatpush.bf16.msra.mxu1 %v974_v45  ;;  %v1085_v2 = vld [vmem:[%s1849_s1 + $0x1a0] sm:$0xf]  ;;  %v1229_v3 = vld [vmem:[%s1849_s1 + $0x1a4] sm:$0xf0]  ;;  %v1022_v6 = vor.u32 %v1213_v1, %v1021_v0  ;;  %v949_v9 = vld [vmem:[%s1849_s1 + $0x90] sm:$0xf]  ;;  %v886_v17 = vor.u32 %v1179_v8, %v885_v7 }
  0x12   :  { %506 = vmatpush.bf16.msra.mxu2 %v1038_v46  ;;  %v1086_v10 = vor.u32 %v1229_v3, %v1085_v2  ;;  %v1195_v11 = vld [vmem:[%s1849_s1 + $0x94] sm:$0xf0]  ;;  %v1013_v12 = vld [vmem:[%s1849_s1 + $0x110] sm:$0xf]  ;;  %v877_v16 = vld [vmem:[%s1849_s1] sm:$0xf] }
  0x13   :  { %525 = vmatpush.bf16.msra.mxu3 %v1102_v50  ;;  %v1211_v13 = vld [vmem:[%s1849_s1 + $0x114] sm:$0xf0]  ;;  %v1077_v14 = vld [vmem:[%s1849_s1 + $0x190] sm:$0xf]  ;;  %v1177_v18 = vld [vmem:[%s1849_s1 + $0x4] sm:$0xf0]  ;;  %v950_v21 = vor.u32 %v1195_v11, %v949_v9 }
  0x14   :  { %469 = vmatpush.bf16.msra.mxu0 %v902_v56  ;;  %v1227_v15 = vld [vmem:[%s1849_s1 + $0x194] sm:$0xf0]  ;;  %v941_v19 = vld [vmem:[%s1849_s1 + $0x80] sm:$0xf]  ;;  %v1193_v20 = vld [vmem:[%s1849_s1 + $0x84] sm:$0xf0]  ;;  %v1014_v22 = vor.u32 %v1211_v13, %v1013_v12  ;;  %v878_v34 = vor.u32 %v1177_v18, %v877_v16 }
  0x15   :  { %488 = vmatpush.bf16.msra.mxu1 %v966_v57  ;;  %v1005_v23 = vld [vmem:[%s1849_s1 + $0x100] sm:$0xf]  ;;  %v1209_v24 = vld [vmem:[%s1849_s1 + $0x104] sm:$0xf0]  ;;  %v1078_v26 = vor.u32 %v1227_v15, %v1077_v14  ;;  %v1170_v29 = vld [vmem:[%s1850_s0 + $0xc] sm:$0xf0]  ;;  %v942_v38 = vor.u32 %v1193_v20, %v941_v19 }
  0x16   :  { %507 = vmatpush.bf16.msra.mxu2 %v1030_v58  ;;  %v1069_v25 = vld [vmem:[%s1849_s1 + $0x180] sm:$0xf]  ;;  %v1225_v27 = vld [vmem:[%s1849_s1 + $0x184] sm:$0xf0]  ;;  %v1168_v30 = vld [vmem:[%s1850_s0 + $0x4] sm:$0xf]  ;;  %v1006_v39 = vor.u32 %v1209_v24, %v1005_v23 }
  0x17   :  { %526 = vmatpush.bf16.msra.mxu3 %v1094_v62  ;;  %v845_v28 = vld [vmem:[%s1850_s0] sm:$0xf]  ;;  %v847_v31 = vld [vmem:[%s1850_s0 + $0x10] sm:$0xf0]  ;;  %v1063_v33 = vld [vmem:[%s1849_s1 + $0x178] sm:$0xf0]  ;;  %v1070_v43 = vor.u32 %v1225_v27, %v1069_v25 }
  0x18   :  { %470 = vmatpush.bf16.msra.mxu0 %v894_v4  ;;  %v1222_v32 = vld [vmem:[%s1849_s1 + $0x174] sm:$0xf]  ;;  %v853_v35 = vld [vmem:[%s1850_s0 + $0x8] sm:$0xf]  ;;  %v999_v37 = vld [vmem:[%s1849_s1 + $0xf8] sm:$0xf0]  ;;  %v1547_v48 = vor.u32 %v1170_v29, %v845_v28  ;;  %v1558_v53 = vor.u32 %v1168_v30, %v847_v31 }
  0x19   :  { %489 = vmatpush.bf16.msra.mxu1 %v958_v5  ;;  %v1206_v36 = vld [vmem:[%s1849_s1 + $0xf4] sm:$0xf]  ;;  %v1171_v40 = vld [vmem:[%s1850_s0 + $0x14] sm:$0xf0]  ;;  %v1169_v41 = vld [vmem:[%s1850_s0 + $0xc] sm:$0xf]  ;;  %v1066_v44 = vor.u32 %v1222_v32, %v1063_v33 }
  0x1a   :  { %508 = vmatpush.bf16.msra.mxu2 %v1022_v6  ;;  %v855_v42 = vld [vmem:[%s1850_s0 + $0x18] sm:$0xf0]  ;;  %v1190_v45 = vld [vmem:[%s1849_s1 + $0x74] sm:$0xf]  ;;  %v1002_v49 = vor.u32 %v1206_v36, %v999_v37  ;;  %v1220_v51 = vld [vmem:[%s1849_s1 + $0x164] sm:$0xf]  ;;  %v1560_v54 = vor.u32 %v1171_v40, %v853_v35 }
  0x1b   :  { %527 = vmatpush.bf16.msra.mxu3 %v1086_v10  ;;  %v935_v46 = vld [vmem:[%s1849_s1 + $0x78] sm:$0xf0]  ;;  %v1238_v47 = vld [vmem:[%s1849_s1 + $0x1f4] sm:$0xf]  ;;  %v1055_v52 = vld [vmem:[%s1849_s1 + $0x168] sm:$0xf0]  ;;  %v1568_v57 = vor.u32 %v1169_v41, %v855_v42 }
  0x1c   :  { %471 = vmatpush.bf16.msra.mxu0 %v886_v17  ;;  %v1127_v50 = vld [vmem:[%s1849_s1 + $0x1f8] sm:$0xf0]  ;;  %v1204_v55 = vld [vmem:[%s1849_s1 + $0xe4] sm:$0xf]  ;;  %v991_v56 = vld [vmem:[%s1849_s1 + $0xe8] sm:$0xf0]  ;;  %v938_v58 = vor.u32 %v1190_v45, %v935_v46  ;;  %v1058_v60 = vor.u32 %v1220_v51, %v1055_v52 }
  0x1d   :  { %490 = vmatpush.bf16.msra.mxu1 %v950_v21  ;;  %v1130_v59 = vor.u32 %v1238_v47, %v1127_v50  ;;  %v1188_v61 = vld [vmem:[%s1849_s1 + $0x64] sm:$0xf]  ;;  %v927_v62 = vld [vmem:[%s1849_s1 + $0x68] sm:$0xf0]  ;;  %v994_v0 = vor.u32 %v1204_v55, %v991_v56  ;;  %v1218_v2 = vld [vmem:[%s1849_s1 + $0x154] sm:$0xf] }
  0x1e   :  { %509 = vmatpush.bf16.msra.mxu2 %v1014_v22  ;;  %v1236_v63 = vld [vmem:[%s1849_s1 + $0x1e4] sm:$0xf]  ;;  %v1119_v1 = vld [vmem:[%s1849_s1 + $0x1e8] sm:$0xf0]  ;;  %v1047_v3 = vld [vmem:[%s1849_s1 + $0x158] sm:$0xf0]  ;;  %v930_v6 = vor.u32 %v1188_v61, %v927_v62 }
  0x1f   :  { %528 = vmatpush.bf16.msra.mxu3 %v1078_v26  ;;  %v1202_v4 = vld [vmem:[%s1849_s1 + $0xd4] sm:$0xf]  ;;  %v983_v5 = vld [vmem:[%s1849_s1 + $0xd8] sm:$0xf0]  ;;  %v1122_v7 = vor.u32 %v1236_v63, %v1119_v1  ;;  %v1050_v8 = vor.u32 %v1218_v2, %v1047_v3  ;;  %v1216_v14 = vld [vmem:[%s1849_s1 + $0x144] sm:$0xf] }
  0x20   :  { %472 = vmatpush.bf16.msra.mxu0 %v878_v34  ;;  %v1186_v9 = vld [vmem:[%s1849_s1 + $0x54] sm:$0xf]  ;;  %v919_v10 = vld [vmem:[%s1849_s1 + $0x58] sm:$0xf0]  ;;  %v986_v12 = vor.u32 %v1202_v4, %v983_v5  ;;  %v1039_v15 = vld [vmem:[%s1849_s1 + $0x148] sm:$0xf0] }
  0x21   :  { %491 = vmatpush.bf16.msra.mxu1 %v942_v38  ;;  %v1234_v11 = vld [vmem:[%s1849_s1 + $0x1d4] sm:$0xf]  ;;  %v1111_v13 = vld [vmem:[%s1849_s1 + $0x1d8] sm:$0xf0]  ;;  %v1200_v16 = vld [vmem:[%s1849_s1 + $0xc4] sm:$0xf]  ;;  %v922_v18 = vor.u32 %v1186_v9, %v919_v10  ;;  %v1042_v23 = vor.u32 %v1216_v14, %v1039_v15 }
  0x22   :  { %510 = vmatpush.bf16.msra.mxu2 %v1006_v39  ;;  %v975_v17 = vld [vmem:[%s1849_s1 + $0xc8] sm:$0xf0]  ;;  %v1184_v19 = vld [vmem:[%s1849_s1 + $0x44] sm:$0xf]  ;;  %v1114_v22 = vor.u32 %v1234_v11, %v1111_v13  ;;  %v861_v25 = vld [vmem:[%s1850_s0 + $0x20] sm:$0xf] }
  0x23   :  { %529 = vmatpush.bf16.msra.mxu3 %v1070_v43  ;;  %473 = vmatmul.bf16.vlgmr.msra.gmra.mxu0 %v1547_v48  ;;  %v911_v20 = vld [vmem:[%s1849_s1 + $0x48] sm:$0xf0]  ;;  %v1232_v21 = vld [vmem:[%s1849_s1 + $0x1c4] sm:$0xf]  ;;  %v1174_v26 = vld [vmem:[%s1850_s0 + $0x2c] sm:$0xf0]  ;;  %v978_v27 = vor.u32 %v1200_v16, %v975_v17 }
  0x24   :  { %492 = vmatmul.bf16.vlgmr.msra.gmra.mxu1 %v1558_v53  ;;  %541 = vmatpush.bf16.msrb.mxu0 %v938_v58  ;;  %v1103_v24 = vld [vmem:[%s1849_s1 + $0x1c8] sm:$0xf0]  ;;  %v1172_v28 = vld [vmem:[%s1850_s0 + $0x24] sm:$0xf]  ;;  %v863_v29 = vld [vmem:[%s1850_s0 + $0x30] sm:$0xf0]  ;;  %v914_v35 = vor.u32 %v1184_v19, %v911_v20 }
  0x25   :  { %560 = vmatpush.bf16.msrb.mxu1 %v1002_v49  ;;  %511 = vmatmul.bf16.vlgmr.msra.gmra.mxu2 %v1560_v54  ;;  %v1214_v30 = vld [vmem:[%s1849_s1 + $0x134] sm:$0xf]  ;;  %v1031_v31 = vld [vmem:[%s1849_s1 + $0x138] sm:$0xf0]  ;;  %v869_v32 = vld [vmem:[%s1850_s0 + $0x28] sm:$0xf]  ;;  %v1106_v39 = vor.u32 %v1232_v21, %v1103_v24  ;;  %v1690_v50 = vor.u32 %v1172_v28, %v863_v29 }
  0x26   :  { %579 = vmatpush.bf16.msrb.mxu2 %v1066_v44  ;;  %530 = vmatmul.bf16.vlgmr.msra.gmra.mxu3 %v1568_v57  ;;  %v1198_v33 = vld [vmem:[%s1849_s1 + $0xb4] sm:$0xf]  ;;  %v967_v34 = vld [vmem:[%s1849_s1 + $0xb8] sm:$0xf0]  ;;  %v1175_v36 = vld [vmem:[%s1850_s0 + $0x34] sm:$0xf0]  ;;  %v1034_v40 = vor.u32 %v1214_v30, %v1031_v31  ;;  %v1679_v44 = vor.u32 %v1174_v26, %v861_v25 }
  0x27   :  { %598 = vmatpush.bf16.msrb.mxu3 %v1130_v59  ;;  %v1173_v37 = vld [vmem:[%s1850_s0 + $0x2c] sm:$0xf]  ;;  %v871_v38 = vld [vmem:[%s1850_s0 + $0x38] sm:$0xf0]  ;;  %v1182_v41 = vld [vmem:[%s1849_s1 + $0x34] sm:$0xf]  ;;  %v970_v45 = vor.u32 %v1198_v33, %v967_v34  ;;  %v1692_v51 = vor.u32 %v1175_v36, %v869_v32 }
  0x28   :  { %542 = vmatpush.bf16.msrb.mxu0 %v930_v6  ;;  %v903_v42 = vld [vmem:[%s1849_s1 + $0x38] sm:$0xf0]  ;;  %v1230_v43 = vld [vmem:[%s1849_s1 + $0x1b4] sm:$0xf]  ;;  %v1212_v47 = vld [vmem:[%s1849_s1 + $0x124] sm:$0xf]  ;;  %v874_v56 = vor.u32 %v1173_v37, %v871_v38 }
  0x29   :  { %561 = vmatpush.bf16.msrb.mxu1 %v994_v0  ;;  %v1095_v46 = vld [vmem:[%s1849_s1 + $0x1b8] sm:$0xf0]  ;;  %v1023_v49 = vld [vmem:[%s1849_s1 + $0x128] sm:$0xf0]  ;;  %v1196_v52 = vld [vmem:[%s1849_s1 + $0xa4] sm:$0xf]  ;;  %v906_v58 = vor.u32 %v1182_v41, %v903_v42 }
  0x2a   :  { %580 = vmatpush.bf16.msrb.mxu2 %v1058_v60  ;;  %v959_v55 = vld [vmem:[%s1849_s1 + $0xa8] sm:$0xf0]  ;;  %v1098_v59 = vor.u32 %v1230_v43, %v1095_v46  ;;  %v1026_v60 = vor.u32 %v1212_v47, %v1023_v49  ;;  %v1180_v61 = vld [vmem:[%s1849_s1 + $0x24] sm:$0xf]  ;;  %v1210_v2 = vld [vmem:[%s1849_s1 + $0x114] sm:$0xf] }
  0x2b   :  { %599 = vmatpush.bf16.msrb.mxu3 %v1122_v7  ;;  %v895_v62 = vld [vmem:[%s1849_s1 + $0x28] sm:$0xf0]  ;;  %v1228_v63 = vld [vmem:[%s1849_s1 + $0x1a4] sm:$0xf]  ;;  %v962_v0 = vor.u32 %v1196_v52, %v959_v55  ;;  %v1015_v3 = vld [vmem:[%s1849_s1 + $0x118] sm:$0xf0] }
  0x2c   :  { %543 = vmatpush.bf16.msrb.mxu0 %v922_v18  ;;  %v1087_v1 = vld [vmem:[%s1849_s1 + $0x1a8] sm:$0xf0]  ;;  %v1194_v4 = vld [vmem:[%s1849_s1 + $0x94] sm:$0xf]  ;;  %v951_v5 = vld [vmem:[%s1849_s1 + $0x98] sm:$0xf0]  ;;  %v898_v6 = vor.u32 %v1180_v61, %v895_v62 }
  0x2d   :  { %562 = vmatpush.bf16.msrb.mxu1 %v986_v12  ;;  %v1090_v7 = vor.u32 %v1228_v63, %v1087_v1  ;;  %v1178_v9 = vld [vmem:[%s1849_s1 + $0x14] sm:$0xf]  ;;  %v887_v10 = vld [vmem:[%s1849_s1 + $0x18] sm:$0xf0]  ;;  %v954_v12 = vor.u32 %v1194_v4, %v951_v5  ;;  %v1208_v14 = vld [vmem:[%s1849_s1 + $0x104] sm:$0xf] }
  0x2e   :  { %581 = vmatpush.bf16.msrb.mxu2 %v1050_v8  ;;  %v1018_v8 = vor.u32 %v1210_v2, %v1015_v3  ;;  %v1226_v11 = vld [vmem:[%s1849_s1 + $0x194] sm:$0xf]  ;;  %v1079_v13 = vld [vmem:[%s1849_s1 + $0x198] sm:$0xf0]  ;;  %v1007_v15 = vld [vmem:[%s1849_s1 + $0x108] sm:$0xf0]  ;;  %v890_v18 = vor.u32 %v1178_v9, %v887_v10 }
  0x2f   :  { %600 = vmatpush.bf16.msrb.mxu3 %v1114_v22  ;;  %v1192_v16 = vld [vmem:[%s1849_s1 + $0x84] sm:$0xf]  ;;  %v943_v17 = vld [vmem:[%s1849_s1 + $0x88] sm:$0xf0]  ;;  %v1082_v19 = vor.u32 %v1226_v11, %v1079_v13  ;;  %v1010_v20 = vor.u32 %v1208_v14, %v1007_v15  ;;  %v99_v28 = vld [vmem:[%s1851_s2] sm:$0x3] }
  0x30   :  { %544 = vmatpush.bf16.msrb.mxu0 %v914_v35  ;;  %v1176_v21 = vld [vmem:[%s1849_s1 + $0x4] sm:$0xf]  ;;  %v879_v22 = vld [vmem:[%s1849_s1 + $0x8] sm:$0xf0]  ;;  %v1773_v29 = vperm.slane %v99_v28, 0  ;;  %v102_v55 = vperm.slane %v99_v28, 1 }
  0x31   :  { %563 = vmatpush.bf16.msrb.mxu1 %v978_v27  ;;  %v1224_v24 = vld [vmem:[%s1849_s1 + $0x184] sm:$0xf]  ;;  %v1071_v25 = vld [vmem:[%s1849_s1 + $0x188] sm:$0xf0]  ;;  %v882_v26 = vor.u32 %v1176_v21, %v879_v22  ;;  %v1247_v21 = vld [vmem:[%s1853_s3 + $0x38] sm:$0xff] }
  0x32   :  { %582 = vmatpush.bf16.msrb.mxu2 %v1042_v23  ;;  %v946_v23 = vor.u32 %v1192_v16, %v943_v17  ;;  %v1074_v27 = vor.u32 %v1224_v24, %v1071_v25 }
  0x33   :  { %601 = vmatpush.bf16.msrb.mxu3 %v1106_v39  ;;  %478 = vmatmul.bf16.gmra.mxu0 %v1679_v44 }
  0x34   :  { %497 = vmatmul.bf16.gmra.mxu1 %v1690_v50  ;;  %545 = vmatpush.bf16.msrb.mxu0 %v906_v58 }
  0x35   :  { %564 = vmatpush.bf16.msrb.mxu1 %v970_v45  ;;  %516 = vmatmul.bf16.gmra.mxu2 %v1692_v51 }
  0x36   :  { %583 = vmatpush.bf16.msrb.mxu2 %v1034_v40  ;;  %535 = vmatmul.bf16.gmra.mxu3 %v874_v56 }
  0x37   :  { %602 = vmatpush.bf16.msrb.mxu3 %v1098_v59 }
  0x38   :  { %546 = vmatpush.bf16.msrb.mxu0 %v898_v6 }
  0x39   :  { %565 = vmatpush.bf16.msrb.mxu1 %v962_v0 }
  0x3a   :  { %584 = vmatpush.bf16.msrb.mxu2 %v1026_v60 }
  0x3b   :  { %603 = vmatpush.bf16.msrb.mxu3 %v1090_v7 }
  0x3c   :  { %547 = vmatpush.bf16.msrb.mxu0 %v890_v18 }
  0x3d   :  { %566 = vmatpush.bf16.msrb.mxu1 %v954_v12 }
  0x3e   :  { %585 = vmatpush.bf16.msrb.mxu2 %v1018_v8 }
  0x3f   :  { %604 = vmatpush.bf16.msrb.mxu3 %v1082_v19 }
  0x40   :  { %548 = vmatpush.bf16.msrb.mxu0 %v882_v26  ;;  %v1246_v26 = vld [vmem:[%s1853_s3 + $0x30] sm:$0xff] }
  0x41   :  { %567 = vmatpush.bf16.msrb.mxu1 %v946_v23 }
  0x42   :  { %586 = vmatpush.bf16.msrb.mxu2 %v1010_v20 }
  0x43   :  { %605 = vmatpush.bf16.msrb.mxu3 %v1074_v27  ;;  %549 = vmatmul.bf16.vlgmr.msrb.gmra.mxu0 %v1547_v48 }
  0x44   :  { %568 = vmatmul.bf16.vlgmr.msrb.gmra.mxu1 %v1558_v53  ;;  %793 = vmatpush.bf16.msra.mxu0 %v1247_v21 }
  0x45   :  { %587 = vmatmul.bf16.vlgmr.msrb.gmra.mxu2 %v1560_v54 }
  0x46   :  { %606 = vmatmul.bf16.vlgmr.msrb.gmra.mxu3 %v1568_v57 }
  0x48   :  { %794 = vmatpush.bf16.msra.mxu0 %v1246_v26 }
  0x53   :  { %554 = vmatmul.bf16.gmra.mxu0 %v1679_v44 }
  0x54   :  { %573 = vmatmul.bf16.gmra.mxu1 %v1690_v50 }
  0x55   :  { %592 = vmatmul.bf16.gmra.mxu2 %v1692_v51 }
  0x56   :  { %611 = vmatmul.bf16.gmra.mxu3 %v874_v56 }
  0xa0   :  { %v474_v48 = vpop.f32.mrf.mxu0 }
  0xa1   :  { %v475_v53 = vadd.f32 %v474_v48, %v1773_v29  ;;  %v493_v30 = vpop.f32.mrf.mxu1 }
  0xa3   :  { %v494_v54 = vadd.f32 %v493_v30, %v475_v53 }
  0xa8   :  { %v512_v31 = vpop.f32.mrf.mxu2  ;;  %v476_v33 = vpop.f32.mrf.mxu0 }
  0xa9   :  { %v513_v57 = vadd.f32 %v512_v31, %v494_v54  ;;  %v531_v32 = vpop.f32.mrf.mxu3  ;;  %v477_v34 = vadd.f32 %v476_v33, %v1773_v29  ;;  %v495_v35 = vpop.f32.mrf.mxu1 }
  0xab   :  { %v1777_v36 = vadd.f32 %v531_v32, %v513_v57  ;;  %v496_v37 = vadd.f32 %v495_v35, %v477_v34  ;;  %v1245_v32 = vld [vmem:[%s1853_s3 + $0x28] sm:$0xff] }
  0xac   :  { %795 = vmatpush.bf16.msra.mxu0 %v1245_v32 }
  0xb0   :  { %v514_v38 = vpop.f32.mrf.mxu2  ;;  %v479_v41 = vpop.f32.mrf.mxu0 }
  0xb1   :  { %v515_v39 = vadd.f32 %v514_v38, %v496_v37  ;;  %v533_v40 = vpop.f32.mrf.mxu3  ;;  %v480_v42 = vadd.f32 %v479_v41, %v1773_v29  ;;  %v498_v43 = vpop.f32.mrf.mxu1  ;;  %v1244_v37 = vld [vmem:[%s1853_s3 + $0x20] sm:$0xff] }
  0xb2   :  { %796 = vmatpush.bf16.msra.mxu0 %v1244_v37 }
  0xb3   :  { %v1780_v44 = vadd.f32 %v533_v40, %v515_v39  ;;  %v499_v45 = vadd.f32 %v498_v43, %v480_v42 }
  0xb8   :  { %v517_v46 = vpop.f32.mrf.mxu2  ;;  %v1782_v50 = vpop.f32.mrf.mxu0 }
  0xb9   :  { %v518_v47 = vadd.f32 %v517_v46, %v499_v45  ;;  %v536_v49 = vpop.f32.mrf.mxu3  ;;  %v1784_v51 = vpop.f32.mrf.mxu1  ;;  %v1243_v45 = vld [vmem:[%s1853_s3 + $0x18] sm:$0xff] }
  0xba   :  { %797 = vmatpush.bf16.msra.mxu0 %v1243_v45 }
  0xbb   :  { %v1786_v52 = vadd.f32 %v536_v49, %v518_v47 }
  0xc0   :  { %v1788_v56 = vpop.f32.mrf.mxu2  ;;  %v550_v59 = vpop.f32.mrf.mxu0 }
  0xc1   :  { %v1790_v58 = vpop.f32.mrf.mxu3  ;;  %v569_v60 = vpop.f32.mrf.mxu1  ;;  %v551_v61 = vadd.f32 %v550_v59, %v102_v55 }
  0xc3   :  { %v570_v62 = vadd.f32 %v569_v60, %v551_v61 }
  0xc8   :  { %v588_v63 = vpop.f32.mrf.mxu2  ;;  %v552_v2 = vpop.f32.mrf.mxu0 }
  0xc9   :  { %v607_v0 = vpop.f32.mrf.mxu3  ;;  %v589_v1 = vadd.f32 %v588_v63, %v570_v62  ;;  %v571_v3 = vpop.f32.mrf.mxu1  ;;  %v553_v5 = vadd.f32 %v552_v2, %v102_v55  ;;  %v1242_v62 = vld [vmem:[%s1853_s3 + $0x10] sm:$0xff] }
  0xca   :  { %798 = vmatpush.bf16.msra.mxu0 %v1242_v62 }
  0xcb   :  { %v608_v4 = vadd.f32 %v607_v0, %v589_v1  ;;  %v572_v7 = vadd.f32 %v571_v3, %v553_v5 }
  0xcd   :  { %v1131_v6 = vmul.f32 -1.442695, %v608_v4 }
  0xcf   :  { %1250 = vpow2.f32 %v1131_v6  ;;  %v617_v6 = vmax.f32 %v1777_v36, 0.0 }
  0xd0   :  { %v590_v8 = vpop.f32.mrf.mxu2  ;;  %v555_v11 = vpop.f32.mrf.mxu0 }
  0xd1   :  { %v609_v9 = vpop.f32.mrf.mxu3  ;;  %v591_v10 = vadd.f32 %v590_v8, %v572_v7  ;;  %v556_v12 = vadd.f32 %v555_v11, %v102_v55  ;;  %v574_v14 = vpop.f32.mrf.mxu1  ;;  %v618_v11 = vmax.f32 %v1780_v44, 0.0 }
  0xd3   :  { %v610_v13 = vadd.f32 %v609_v9, %v591_v10  ;;  %v575_v17 = vadd.f32 %v574_v14, %v556_v12  ;;  %v1241_v10 = vld [vmem:[%s1853_s3 + $0x8] sm:$0xff]  ;;  %v482_v14 = vadd.f32 %v1782_v50, %v1773_v29 }
  0xd4   :  { %799 = vmatpush.bf16.msra.mxu0 %v1241_v10 }
  0xd5   :  { %v1251_v15 = vpop.eup %1250  ;;  %v1132_v16 = vmul.f32 -1.442695, %v610_v13  ;;  %v501_v44 = vadd.f32 %v1784_v51, %v482_v14 }
  0xd6   :  { %v633_v18 = vadd.f32 1.0, %v1251_v15 }
  0xd7   :  { %1252 = vpow2.f32 %v1132_v16 }
  0xd8   :  { %1254 = vrcp.f32 %v633_v18  ;;  %v593_v19 = vpop.f32.mrf.mxu2  ;;  %v557_v23 = vpop.f32.mrf.mxu0  ;;  %v648_v49 = vand.u32 2147483648, %v633_v18  ;;  %vm642_vm1 = vweird.f32 %v633_v18 }
  0xd9   :  { %v612_v20 = vpop.f32.mrf.mxu3  ;;  %v594_v22 = vadd.f32 %v593_v19, %v575_v17  ;;  %v558_v25 = vadd.f32 %v557_v23, %v102_v55  ;;  %v576_v30 = vpop.f32.mrf.mxu1  ;;  %v646_v55 = vand.u32 2147483647, %v633_v18 }
  0xda   :  { %v649_v2 = vor.u32 1.1754944e-38, %v648_v49 }
  0xdb   :  { %v613_v24 = vadd.f32 %v612_v20, %v594_v22  ;;  %v577_v31 = vadd.f32 %v576_v30, %v558_v25  ;;  %vm647_vm4 = vcmp.eq.f32.partialorder %v646_v55, 8.507059e+37  ;;  %v520_v22 = vadd.f32 %v1788_v56, %v501_v44 }
  0xdd   :  { %v1253_v27 = vpop.eup %1252  ;;  %v1133_v28 = vmul.f32 -1.442695, %v613_v24 }
  0xde   :  { %v1255_v48 = vpop.eup %1254  ;;  %v634_v53 = vadd.f32 1.0, %v1253_v27  ;;  %v539_v27 = vadd.f32 %v1790_v58, %v520_v22 }
  0xdf   :  { %v638_v54 = vmul.f32 %v1255_v48, %v633_v18  ;;  %1256 = vpow2.f32 %v1133_v28  ;;  %vm643_vm0 = vweird.f32 %v1255_v48  ;;  %v1240_v18 = vld [vmem:[%s1853_s3] sm:$0xff] }
  0xe0   :  { %1258 = vrcp.f32 %v634_v53  ;;  %v595_v57 = vpop.f32.mrf.mxu2  ;;  %vm1810_vm2 = vmor %vm642_vm1, %vm643_vm0  ;;  %v663_v61 = vand.u32 2147483648, %v634_v53  ;;  %v661_v1 = vand.u32 2147483647, %v634_v53  ;;  %vm657_vm5 = vweird.f32 %v634_v53  ;;  %800 = vmatpush.bf16.msra.mxu0 %v1240_v18 }
  0xe1   :  { %v639_v33 = vsub.f32 1.0, %v638_v54  ;;  %v596_v34 = vadd.f32 %v595_v57, %v577_v31  ;;  %v614_v35 = vpop.f32.mrf.mxu3  ;;  %v619_v31 = vmax.f32 %v1786_v52, 0.0  ;;  %vm741_vm0 = vcmask 1041409  }
  0xe2   :  { %v664_v8 = vor.u32 1.1754944e-38, %v663_v61  ;;  %vm662_vm7 = vcmp.eq.f32.partialorder %v661_v1, 8.507059e+37  ;;  %vm812_vm1 = vcmask 1041408  }
  0xe3   :  { %v640_v38 = vmul.f32 %v1255_v48, %v639_v33  ;;  %v615_v39 = vadd.f32 %v614_v35, %v596_v34  ;;  %v620_v33 = vmax.f32 %v539_v27, 0.0 }
  0xe5   :  { %v1257_v40 = vpop.eup %1256  ;;  %v1134_v41 = vmul.f32 -1.442695, %v615_v39  ;;  %v641_v46 = vadd.f32 %v1255_v48, %v640_v38 }
  0xe6   :  { %v1259_v42 = vpop.eup %1258  ;;  %v1804_v43 = vadd.f32 1.0, %v1257_v40 }
  0xe7   :  { %v653_v47 = vmul.f32 %v1259_v42, %v634_v53  ;;  %1260 = vpow2.f32 %v1134_v41  ;;  %v645_v63 = vsel %vm1810_vm2, %v1255_v48, %v641_v46  ;;  %vm658_vm3 = vweird.f32 %v1259_v42 }
  0xe8   :  { %1262 = vrcp.f32 %v1804_v43  ;;  %v650_v7 = vsel %vm647_vm4, %v649_v2, %v645_v63  ;;  %vm659_vm6 = vmor %vm657_vm5, %vm658_vm3  ;;  %v678_v24 = vand.u32 2147483648, %v1804_v43  ;;  %vm672_vm9 = vweird.f32 %v1804_v43 }
  0xe9   :  { %v654_v59 = vsub.f32 1.0, %v653_v47  ;;  %v697_v36 = vmul.f32 %v650_v7, %v617_v6  ;;  %v676_v25 = vand.u32 2147483647, %v1804_v43 }
  0xea   :  { %v679_v30 = vor.u32 1.1754944e-38, %v678_v24 }
  0xeb   :  { %v655_v0 = vmul.f32 %v1259_v42, %v654_v59  ;;  %vm677_vm12 = vcmp.eq.f32.partialorder %v676_v25, 8.507059e+37 }
  0xed   :  { %v1261_v3 = vpop.eup %1260  ;;  %v656_v4 = vadd.f32 %v1259_v42, %v655_v0  ;;  %v1248_v0 = vld [vmem:[%s1852_s4] ss:$0 sm:$0xff] }
  0xee   :  { %v1263_v5 = vpop.eup %1262  ;;  %v636_v9 = vadd.f32 1.0, %v1261_v3  ;;  %v1249_v3 = vld [vmem:[%s1854_s5] ss:$0 sm:$0xff] }
  0xef   :  { %v660_v12 = vsel %vm659_vm6, %v1259_v42, %v656_v4  ;;  %v668_v13 = vmul.f32 %v1263_v5, %v1804_v43  ;;  %vm673_vm8 = vweird.f32 %v1263_v5 }
  0xf0   :  { %v665_v15 = vsel %vm662_vm7, %v664_v8, %v660_v12  ;;  %1264 = vrcp.f32 %v636_v9  ;;  %vm674_vm10 = vmor %vm672_vm9, %vm673_vm8  ;;  %v691_v28 = vand.u32 2147483647, %v636_v9  ;;  %v693_v51 = vand.u32 2147483648, %v636_v9 }
  0xf1   :  { %v698_v16 = vmul.f32 %v665_v15, %v618_v11  ;;  %v669_v17 = vsub.f32 1.0, %v668_v13  ;;  %vm687_vm13 = vweird.f32 %v636_v9  ;;  %v817_v8 = vstv %s1855_s6 }
  0xf2   :  { %v694_v32 = vor.u32 1.1754944e-38, %v693_v51  ;;  %vm692_vm15 = vcmp.eq.f32.partialorder %v691_v28, 8.507059e+37 }
  0xf3   :  { %v670_v19 = vmul.f32 %v1263_v5, %v669_v17  ;;  %v701_v20 = vmax.f32 %v697_v36, %v698_v16 }
  0xf5   :  { %v671_v23 = vadd.f32 %v1263_v5, %v670_v19  ;;  %v702_v50 = vrot.slane %v701_v20, 4 }
  0xf6   :  { %v1265_v21 = vpop.eup %1264 }
  0xf7   :  { %v683_v29 = vmul.f32 %v1265_v21, %v636_v9  ;;  %v675_v48 = vsel %vm674_vm10, %v1263_v5, %v671_v23  ;;  %vm688_vm11 = vweird.f32 %v1265_v21  ;;  %v703_v56 = vmax.f32 %v701_v20, %v702_v50 }
  0xf8   :  { %v680_v57 = vsel %vm677_vm12, %v679_v30, %v675_v48  ;;  %vm689_vm14 = vmor %vm687_vm13, %vm688_vm11 }
  0xf9   :  { %v684_v26 = vsub.f32 1.0, %v683_v29  ;;  %v704_v58 = vrot.slane %v703_v56, 2  ;;  %v699_v37 = vmul.f32 %v680_v57, %v619_v31 }
  0xfb   :  { %v685_v53 = vmul.f32 %v1265_v21, %v684_v26  ;;  %v705_v39 = vmax.f32 %v703_v56, %v704_v58 }
  0xfd   :  { %v686_v54 = vadd.f32 %v1265_v21, %v685_v53  ;;  %v706_v42 = vrot.slane %v705_v39, 1 }
  0xff   :  { %v690_v34 = vsel %vm689_vm14, %v1265_v21, %v686_v54  ;;  %v707_v46 = vmax.f32 %v705_v39, %v706_v42 }
 0x100   :  { %v695_v35 = vsel %vm692_vm15, %v694_v32, %v690_v34 }
 0x101   :  { %v700_v38 = vmul.f32 %v695_v35, %v620_v33  ;;  %v715_v55 = vpack.c.bf16 %v707_v46, %v707_v46 }
 0x103   :  { %v708_v40 = vmax.f32 %v699_v37, %v700_v38  ;;  %v739_v60 = vunpack.c.l.b16 %v715_v55 }
 0x105   :  { %v709_v41 = vrot.slane %v708_v40, 4 }
 0x107   :  { %v710_v43 = vmax.f32 %v708_v40, %v709_v41 }
 0x109   :  { %v711_v45 = vrot.slane %v710_v43, 2 }
 0x10b   :  { %v712_v47 = vmax.f32 %v710_v43, %v711_v45 }
 0x10d   :  { %v713_v49 = vrot.slane %v712_v47, 1 }
 0x10f   :  { %v714_v52 = vmax.f32 %v712_v47, %v713_v49 }
 0x111   :  { %v716_v59 = vpack.c.bf16 %v714_v52, %v714_v52 }
 0x113   :  { %v740_v61 = vunpack.c.l.b16 %v716_v59 }
 0x115   :  { %v742_v62 = vsel %vm741_vm0, %v740_v61, %v739_v60 }
 0x116   :  { %v743_v63 = vpack.c.b16 %v742_v62, %v742_v62 }
 0x118   :  { %801 = vmatmul.bf16.vlgmr.msra.gmra.mxu0 %v743_v63 }
 0x195   :  { %v802_v1 = vpop.f32.mrf.mxu0 }
 0x196   :  { %v803_v2 = vadd.f32 %v1248_v0, %v802_v1 }
 0x198   :  { %v806_v4 = vmax.f32 %v803_v2, 0.0 }
 0x19a   :  { %v811_v5 = vmul.f32 %v1249_v3, %v806_v4 }
 0x19c   :  { %v813_v6 = vsel %vm812_vm1, %v811_v5, 0.0 }
 0x19d   :  { %v804_v7 = vpop.f32.mrf.mxu0  ;;  %814 = vadd.xlane.f32.xlu0 %v813_v6 }
 0x210   :  { %v815_v9 = vpop.xlane.xlu0 %814 }
 0x211   :  { %v818_v10 = vadd.f32 %v817_v8, %v815_v9 }
 0x213   :  { %v1167_v11 = vmul.f32 -1.442695, %v818_v10 }
 0x215   :  { %1266 = vpow2.f32 %v1167_v11 }
 0x21b   :  { %v1267_v12 = vpop.eup %1266 }
 0x21c   :  { %v822_v13 = vadd.f32 1.0, %v1267_v12 }
 0x21e   :  { %1268 = vrcp.f32 %v822_v13  ;;  %v834_v16 = vand.u32 2147483648, %v822_v13  ;;  %v832_v18 = vand.u32 2147483647, %v822_v13  ;;  %vm828_vm3 = vweird.f32 %v822_v13 }
 0x220   :  { %v835_v20 = vor.u32 1.1754944e-38, %v834_v16  ;;  %vm833_vm5 = vcmp.eq.f32.partialorder %v832_v18, 8.507059e+37 }
 0x224   :  { %v1269_v14 = vpop.eup %1268 }
 0x225   :  { %v824_v15 = vmul.f32 %v1269_v14, %v822_v13  ;;  %vm829_vm2 = vweird.f32 %v1269_v14 }
 0x226   :  { %vm830_vm4 = vmor %vm828_vm3, %vm829_vm2 }
 0x227   :  { %v825_v36 = vsub.f32 1.0, %v824_v15 }
 0x229   :  { %v826_v17 = vmul.f32 %v1269_v14, %v825_v36 }
 0x22b   :  { %v827_v19 = vadd.f32 %v1269_v14, %v826_v17 }
 0x22d   :  { %v831_v44 = vsel %vm830_vm4, %v1269_v14, %v827_v19 }
 0x22e   :  { %v836_v21 = vsel %vm833_vm5, %v835_v20, %v831_v44 }
 0x22f   :  { %838 = vst [vmem:[%s1856_s7] sm:$0x3] %v836_v21 }

</bundles_post_ra>
